<compile_context>
chip_gen: v5e
topology: v5e:2x2
jax: 0.10.0
libtpu: 0.0.40
codegen_flags: <defaults>
</compile_context>

<pallas_src>
import functools
import math

import numpy as np
import jax
import jax.numpy as jnp
from jax.experimental import pallas as pl
from jax.experimental.pallas import tpu as pltpu

LANE = 128
# 48 MiB: safe headroom on v7x (64 MiB physical per TC); v5e/v6e have 128 MiB so
# this is conservative there, but our tiled working sets are only a few MiB.
_VMEM_LIMIT = 48 * 1024 * 1024


def _round_up(n, m):
    return ((n + m - 1) // m) * m


def _pad2d(a, rows, cols):
    r, c = a.shape
    if (r, c) == (rows, cols):
        return a
    return jnp.pad(a, ((0, rows - r), (0, cols - c)))


# --------------------------------------------------------------------------- #
# Fused small-graph path: both layers in one pallas_call, everything in VMEM.  #
# --------------------------------------------------------------------------- #
def _fused_gnn_kernel(adj_ref, x_ref, w1_ref, w2_ref, o_ref):
    adj = adj_ref[...]
    xw1 = jnp.dot(x_ref[...], w1_ref[...], preferred_element_type=jnp.float32)
    h = jnp.dot(adj, xw1.astype(jnp.bfloat16), preferred_element_type=jnp.float32)
    h = jnp.maximum(h, 0.0).astype(jnp.bfloat16)
    hw2 = jnp.dot(h, w2_ref[...], preferred_element_type=jnp.float32)
    out = jnp.dot(adj, hw2.astype(jnp.bfloat16), preferred_element_type=jnp.float32)
    o_ref[...] = out.astype(o_ref.dtype)


def _gnn_fused(adj, x, w1, w2, cls_p):
    n = adj.shape[0]
    din, hid = w1.shape
    vmem = lambda: pl.BlockSpec(memory_space=pltpu.MemorySpace.VMEM)
    flops = 2 * (n * din * hid + n * n * hid + n * hid * cls_p + n * n * cls_p)
    byts = 2 * (n * n + n * din + din * hid + hid * cls_p + n * cls_p)
    return pl.pallas_call(
        _fused_gnn_kernel,
        out_shape=jax.ShapeDtypeStruct((n, cls_p), jnp.bfloat16),
        in_specs=[vmem(), vmem(), vmem(), vmem()],
        out_specs=vmem(),
        compiler_params=pltpu.CompilerParams(vmem_limit_bytes=_VMEM_LIMIT),
        cost_estimate=pl.CostEstimate(flops=flops, transcendentals=0,
                                      bytes_accessed=byts),
    )(adj, x, w1, w2)


# --------------------------------------------------------------------------- #
# Hoisted XW kernel: computed once per layer (not per adjacency row block).    #
# --------------------------------------------------------------------------- #
def _xw_kernel(x_ref, w_ref, o_ref):
    o_ref[...] = jnp.dot(x_ref[...], w_ref[...],
                         preferred_element_type=jnp.float32).astype(o_ref.dtype)


def _compute_xw(x, w, *, tm):
    n, din = x.shape
    dout = w.shape[1]
    return pl.pallas_call(
        _xw_kernel,
        out_shape=jax.ShapeDtypeStruct((n, dout), jnp.bfloat16),
        grid=(n // tm,),
        in_specs=[
            pl.BlockSpec((tm, din), lambda i: (i, 0)),
            # Grid-invariant weight block (constant index map stays resident;
            # could be forced single-buffered with pipeline_mode=pl.Buffered(1)
            # if VMEM ever becomes the limiter).
            pl.BlockSpec((din, dout), lambda i: (0, 0)),
        ],
        out_specs=pl.BlockSpec((tm, dout), lambda i: (i, 0)),
        compiler_params=pltpu.CompilerParams(
            dimension_semantics=("parallel",),
            vmem_limit_bytes=_VMEM_LIMIT),
        cost_estimate=pl.CostEstimate(
            flops=2 * n * din * dout, transcendentals=0,
            bytes_accessed=2 * (n * din + din * dout + n * dout)),
    )(x, w)


# --------------------------------------------------------------------------- #
# Dense adjacency matmul: adj @ XW, row-block parallel, K-tiled accumulation.  #
# --------------------------------------------------------------------------- #
def _adj_matmul_kernel(adj_ref, xw_ref, o_ref, acc_ref, *, apply_relu):
    @pl.when(pl.program_id(1) == 0)
    def _():
        acc_ref[...] = jnp.zeros_like(acc_ref)

    acc_ref[...] += jnp.dot(adj_ref[...], xw_ref[...],
                            preferred_element_type=jnp.float32)

    @pl.when(pl.program_id(1) == pl.num_programs(1) - 1)
    def _():
        r = acc_ref[...]
        if apply_relu:
            r = jnp.maximum(r, 0.0)
        o_ref[...] = r.astype(o_ref.dtype)


def _adj_matmul_dense(adj, xw, *, apply_relu, tm, tk):
    n = adj.shape[0]
    dout = xw.shape[1]
    kernel = functools.partial(_adj_matmul_kernel, apply_relu=apply_relu)
    return pl.pallas_call(
        kernel,
        out_shape=jax.ShapeDtypeStruct((n, dout), jnp.bfloat16),
        grid=(n // tm, n // tk),
        in_specs=[
            pl.BlockSpec((tm, tk), lambda i, k: (i, k)),
            pl.BlockSpec((tk, dout), lambda i, k: (k, 0)),
        ],
        out_specs=pl.BlockSpec((tm, dout), lambda i, k: (i, 0)),
        scratch_shapes=[pltpu.VMEM((tm, dout), jnp.float32)],
        compiler_params=pltpu.CompilerParams(
            dimension_semantics=("parallel", "arbitrary"),
            vmem_limit_bytes=_VMEM_LIMIT),
        cost_estimate=pl.CostEstimate(
            flops=2 * n * n * dout, transcendentals=0,
            bytes_accessed=2 * (n * n + n * dout + n * dout)),
    )(adj, xw)


# --------------------------------------------------------------------------- #
# Block-sparse adjacency matmul: scalar-prefetched schedule of nonzero blocks. #
# --------------------------------------------------------------------------- #
def _adj_matmul_sparse_kernel(rb_ref, cb_ref, first_ref, last_ref,
                              adj_ref, xw_ref, o_ref, acc_ref, *, apply_relu):
    i = pl.program_id(0)

    @pl.when(first_ref[i] != 0)
    def _():
        acc_ref[...] = jnp.zeros_like(acc_ref)

    acc_ref[...] += jnp.dot(adj_ref[...], xw_ref[...],
                            preferred_element_type=jnp.float32)

    @pl.when(last_ref[i] != 0)
    def _():
        r = acc_ref[...]
        if apply_relu:
            r = jnp.maximum(r, 0.0)
        o_ref[...] = r.astype(o_ref.dtype)


def _adj_matmul_sparse(adj, xw, schedule, *, apply_relu, tm, tk):
    rb, cb, first, last = schedule
    n = adj.shape[0]
    dout = xw.shape[1]
    n_steps = int(rb.shape[0])
    kernel = functools.partial(_adj_matmul_sparse_kernel, apply_relu=apply_relu)
    grid_spec = pltpu.PrefetchScalarGridSpec(
        num_scalar_prefetch=4,
        grid=(n_steps,),
        in_specs=[
            pl.BlockSpec((tm, tk),
                         lambda i, rb_s, cb_s, fi_s, la_s: (rb_s[i], cb_s[i])),
            pl.BlockSpec((tk, dout),
                         lambda i, rb_s, cb_s, fi_s, la_s: (cb_s[i], 0)),
        ],
        out_specs=pl.BlockSpec((tm, dout),
                               lambda i, rb_s, cb_s, fi_s, la_s: (rb_s[i], 0)),
        scratch_shapes=[pltpu.VMEM((tm, dout), jnp.float32)],
    )
    return pl.pallas_call(
        kernel,
        out_shape=jax.ShapeDtypeStruct((n, dout), jnp.bfloat16),
        grid_spec=grid_spec,
        compiler_params=pltpu.CompilerParams(
            dimension_semantics=("arbitrary",),
            vmem_limit_bytes=_VMEM_LIMIT),
        cost_estimate=pl.CostEstimate(
            flops=2 * n_steps * tm * tk * dout, transcendentals=0,
            bytes_accessed=2 * (n_steps * tm * tk + n_steps * tk * dout
                                + n * dout)),
    )(rb, cb, first, last, adj, xw)


def build_block_schedule(adj, n_pad, tm, tk):
    """Host-side schedule of nonzero (tm, tk) blocks of the (padded) adjacency.

    Returns int32 arrays (row_block, col_block, is_first, is_last), one entry
    per nonzero block, ordered row-block-major so all contributions to one
    output row block are contiguous in the 1-D grid.  Requires a concrete adj
    (the GMNN adjacency is a fixed precomputed matrix, so this is computed once).
    """
    a_np = np.asarray(jax.device_get(adj), dtype=np.float32)
    a = np.zeros((n_pad, n_pad), dtype=np.float32)
    a[: a_np.shape[0], : a_np.shape[1]] = a_np
    gm, gk = n_pad // tm, n_pad // tk
    nz = np.abs(a).reshape(gm, tm, gk, tk).sum(axis=(1, 3)) > 0.0
    rbs, cbs, firsts, lasts = [], [], [], []
    for m in range(gm):
        cols = np.nonzero(nz[m])[0].tolist()
        if not cols:
            cols = [0]  # empty row block: one zero block so its output is written (zeros)
        for j, c in enumerate(cols):
            rbs.append(m)
            cbs.append(c)
            firsts.append(1 if j == 0 else 0)
            lasts.append(1 if j == len(cols) - 1 else 0)
    as_i32 = lambda v: jnp.asarray(np.asarray(v, dtype=np.int32))
    return as_i32(rbs), as_i32(cbs), as_i32(firsts), as_i32(lasts)


# --------------------------------------------------------------------------- #
# Wrapper                                                                      #
# --------------------------------------------------------------------------- #
def gnnp_forward(x, adj, w1, w2, *, path="auto", block_rows=512, block_k=512,
                 schedule=None):
    """out = adj @ relu(adj @ (x @ w1)) @ w2   (inference; both dropouts = identity).

    path:
      "fused"  — both layers in one pallas_call, everything resident in VMEM
                 (small graphs; removes the h HBM round trip and the 2nd adj read).
      "dense"  — per layer: XW hoisted into its own kernel, then a row x K tiled
                 adj @ XW with an f32 VMEM accumulator.
      "sparse" — like "dense" but only nonzero (tm, tk) adjacency blocks are
                 visited, via a scalar-prefetched host-built schedule
                 (adj must be concrete, e.g. the fixed GMNN graph).
      "auto"   — fused when the padded graph fits comfortably in VMEM, else dense.
    """
    N, dim_in = x.shape
    hidden = w1.shape[1]
    num_class = w2.shape[1]
    assert adj.shape == (N, N)
    assert w1.shape[0] == dim_in and w2.shape[0] == hidden
    assert block_rows % 8 == 0 and block_k % LANE == 0

    din_p = _round_up(dim_in, LANE)
    hid_p = _round_up(hidden, LANE)
    cls_p = _round_up(num_class, LANE)
    n_p = _round_up(N, LANE)

    if path == "auto":
        path = "fused" if n_p <= 2048 else "dense"

    if path == "fused":
        adj_b = _pad2d(adj.astype(jnp.bfloat16), n_p, n_p)
        x_b = _pad2d(x.astype(jnp.bfloat16), n_p, din_p)
        w1_b = _pad2d(w1.astype(jnp.bfloat16), din_p, hid_p)
        w2_b = _pad2d(w2.astype(jnp.bfloat16), hid_p, cls_p)
        out = _gnn_fused(adj_b, x_b, w1_b, w2_b, cls_p)
    else:
        tm = min(block_rows, n_p)
        tk = min(block_k, n_p)
        # Pad N so both tiles divide it exactly (zero rows/cols are exact math).
        n_p = _round_up(n_p, math.lcm(tm, tk))
        adj_b = _pad2d(adj.astype(jnp.bfloat16), n_p, n_p)
        x_b = _pad2d(x.astype(jnp.bfloat16), n_p, din_p)
        w1_b = _pad2d(w1.astype(jnp.bfloat16), din_p, hid_p)
        w2_b = _pad2d(w2.astype(jnp.bfloat16), hid_p, cls_p)

        if path == "sparse" and schedule is None:
            schedule = build_block_schedule(adj, n_p, tm, tk)

        # Layer 1: hoisted XW, then (relu of) adj @ XW.
        xw1 = _compute_xw(x_b, w1_b, tm=tm)
        if path == "sparse":
            h = _adj_matmul_sparse(adj_b, xw1, schedule, apply_relu=True,
                                   tm=tm, tk=tk)
        else:
            h = _adj_matmul_dense(adj_b, xw1, apply_relu=True, tm=tm, tk=tk)

        # Layer 2.
        hw2 = _compute_xw(h, w2_b, tm=tm)
        if path == "sparse":
            out = _adj_matmul_sparse(adj_b, hw2, schedule, apply_relu=False,
                                     tm=tm, tk=tk)
        else:
            out = _adj_matmul_dense(adj_b, hw2, apply_relu=False, tm=tm, tk=tk)

    # Slice real rows/classes and only then widen to f32 (padded write-back
    # stays bf16 / lane-dense).
    return out[:N, :num_class].astype(jnp.float32)


def init_gcn_weight(key, fan_in, fan_out):
    # Matches GraphConvolution.reset_parameters:
    #   stdv = 1 / sqrt(weight.size(1)); weight.uniform_(-stdv, stdv)
    stdv = 1.0 / math.sqrt(fan_out)
    return jax.random.uniform(
        key, (fan_in, fan_out), dtype=jnp.float32, minval=-stdv, maxval=stdv)


def _ref_bf16(x, adj, w1, w2):
    # Same math/rounding points as the kernels (bf16 operands, f32 accumulation,
    # bf16 intermediates and bf16 final store).
    ab = adj.astype(jnp.bfloat16)
    xw = jnp.dot(x.astype(jnp.bfloat16), w1.astype(jnp.bfloat16),
                 preferred_element_type=jnp.float32).astype(jnp.bfloat16)
    h = jnp.maximum(jnp.dot(ab, xw, preferred_element_type=jnp.float32),
                    0.0).astype(jnp.bfloat16)
    hw = jnp.dot(h, w2.astype(jnp.bfloat16),
                 preferred_element_type=jnp.float32).astype(jnp.bfloat16)
    out = jnp.dot(ab, hw, preferred_element_type=jnp.float32).astype(jnp.bfloat16)
    return out.astype(jnp.float32)


if __name__ == "__main__":
    # opt: use_attribute_p=True, num_class=8, num_feature=24 -> dim_in=32, hidden=32
    num_class = 8
    num_feature = 24
    dim_in = num_class + num_feature      # 32
    hidden_dim = 32

    key = jax.random.PRNGKey(0)
    k1, k2, k3, k4, k5, k6 = jax.random.split(key, 6)

    def make_graph(key_x, key_adj, n, band=None):
        x = jax.random.uniform(key_x, (n, dim_in), dtype=jnp.float32)
        a = (jax.random.uniform(key_adj, (n, n)) < 0.05).astype(jnp.float32)
        if band is not None:   # banded sparsity -> some all-zero adjacency blocks
            idx = jnp.arange(n)
            a = a * (jnp.abs(idx[:, None] - idx[None, :]) <= band).astype(jnp.float32)
        a = a + jnp.eye(n, dtype=jnp.float32)
        adj = a / jnp.sum(a, axis=1, keepdims=True)   # row-normalized
        return x, adj

    w1 = init_gcn_weight(k5, dim_in, hidden_dim)
    w2 = init_gcn_weight(k6, hidden_dim, num_class)

    # --- small graph (N=128): fused single-call path -------------------------
    x_s, adj_s = make_graph(k1, k2, 128)
    out_s = jax.block_until_ready(gnnp_forward(x_s, adj_s, w1, w2))   # auto -> fused
    ref_s = _ref_bf16(x_s, adj_s, w1, w2)
    ref_s_f32 = adj_s @ jnp.maximum(adj_s @ (x_s @ w1), 0.0) @ w2
    assert out_s.shape == (128, num_class)
    assert jnp.allclose(out_s, ref_s, atol=1e-2, rtol=1e-2)
    assert jnp.allclose(out_s, ref_s_f32, atol=1e-1, rtol=1e-1)

    # --- larger ragged graph (N=600): tiled dense, block-sparse, fused -------
    n_big = 600
    x_b, adj_big = make_graph(k3, k4, n_big, band=96)
    out_dense = jax.block_until_ready(
        gnnp_forward(x_b, adj_big, w1, w2, path="dense",
                     block_rows=256, block_k=256))
    out_sparse = jax.block_until_ready(
        gnnp_forward(x_b, adj_big, w1, w2, path="sparse",
                     block_rows=256, block_k=256))
    out_fused = jax.block_until_ready(
        gnnp_forward(x_b, adj_big, w1, w2, path="fused"))
    ref_b = _ref_bf16(x_b, adj_big, w1, w2)
    assert out_dense.shape == (n_big, num_class)
    assert jnp.allclose(out_dense, ref_b, atol=1e-2, rtol=1e-2)
    assert jnp.allclose(out_sparse, ref_b, atol=1e-2, rtol=1e-2)
    assert jnp.allclose(out_fused, ref_b, atol=1e-2, rtol=1e-2)
    assert jnp.allclose(out_sparse, out_dense, atol=1e-2, rtol=1e-2)

    print("KERNEL_OK")
</pallas_src>

<mosaic_0001>
module attributes {stable_mosaic.version = 11 : i64} {
  func.func @_fused_gnn_kernel(%arg0: memref<128x128xbf16, #tpu.memory_space<vmem>>, %arg1: memref<128x128xbf16, #tpu.memory_space<vmem>>, %arg2: memref<128x128xbf16, #tpu.memory_space<vmem>>, %arg3: memref<128x128xbf16, #tpu.memory_space<vmem>>, %arg4: memref<128x128xbf16, #tpu.memory_space<vmem>>) attributes {dimension_semantics = [], scalar_prefetch = 0 : i64, scratch_operands = 0 : i64, tpu.core_type = #tpu.core_type<tc>} {
    %c0 = arith.constant 0 : index
    %c0_0 = arith.constant 0 : index
    %0 = vector.load %arg0[%c0, %c0_0] : memref<128x128xbf16, #tpu.memory_space<vmem>>, vector<128x128xbf16>
    %c0_1 = arith.constant 0 : index
    %c0_2 = arith.constant 0 : index
    %1 = vector.load %arg1[%c0_1, %c0_2] : memref<128x128xbf16, #tpu.memory_space<vmem>>, vector<128x128xbf16>
    %c0_3 = arith.constant 0 : index
    %c0_4 = arith.constant 0 : index
    %2 = vector.load %arg2[%c0_3, %c0_4] : memref<128x128xbf16, #tpu.memory_space<vmem>>, vector<128x128xbf16>
    %cst = arith.constant dense<0.000000e+00> : vector<128x128xf32>
    %3 = tpu.matmul %1, %2, %cst {dimension_numbers = #tpu.dot_dimension_numbers<[1], [0], [0], [1], [0, 0, 1, 1], [], []>} : vector<128x128xbf16>, vector<128x128xbf16>, vector<128x128xf32> -> vector<128x128xf32>
    %4 = arith.truncf %3 : vector<128x128xf32> to vector<128x128xbf16>
    %cst_5 = arith.constant dense<0.000000e+00> : vector<128x128xf32>
    %5 = tpu.matmul %0, %4, %cst_5 {dimension_numbers = #tpu.dot_dimension_numbers<[1], [0], [0], [1], [0, 0, 1, 1], [], []>} : vector<128x128xbf16>, vector<128x128xbf16>, vector<128x128xf32> -> vector<128x128xf32>
    %cst_6 = arith.constant 0.000000e+00 : f32
    %6 = vector.broadcast %cst_6 : f32 to vector<128x128xf32>
    %7 = arith.maximumf %5, %6 : vector<128x128xf32>
    %8 = arith.truncf %7 : vector<128x128xf32> to vector<128x128xbf16>
    %c0_7 = arith.constant 0 : index
    %c0_8 = arith.constant 0 : index
    %9 = vector.load %arg3[%c0_7, %c0_8] : memref<128x128xbf16, #tpu.memory_space<vmem>>, vector<128x128xbf16>
    %cst_9 = arith.constant dense<0.000000e+00> : vector<128x128xf32>
    %10 = tpu.matmul %8, %9, %cst_9 {dimension_numbers = #tpu.dot_dimension_numbers<[1], [0], [0], [1], [0, 0, 1, 1], [], []>} : vector<128x128xbf16>, vector<128x128xbf16>, vector<128x128xf32> -> vector<128x128xf32>
    %11 = arith.truncf %10 : vector<128x128xf32> to vector<128x128xbf16>
    %cst_10 = arith.constant dense<0.000000e+00> : vector<128x128xf32>
    %12 = tpu.matmul %0, %11, %cst_10 {dimension_numbers = #tpu.dot_dimension_numbers<[1], [0], [0], [1], [0, 0, 1, 1], [], []>} : vector<128x128xbf16>, vector<128x128xbf16>, vector<128x128xf32> -> vector<128x128xf32>
    %13 = arith.truncf %12 : vector<128x128xf32> to vector<128x128xbf16>
    %c0_11 = arith.constant 0 : index
    %c0_12 = arith.constant 0 : index
    %14 = vector.load %arg4[%c0_11, %c0_12] : memref<128x128xbf16, #tpu.memory_space<vmem>>, vector<128x128xbf16>
    tpu.vector_store %arg4[%c0_11, %c0_12], %13 {strides = array<i32>} : memref<128x128xbf16, #tpu.memory_space<vmem>>, vector<128x128xbf16>,
    return
  }
}

</mosaic_0001>

<bundles_post_ra>
// kernel: tpu_custom_call.1
= control target key start
LH: loop header
LB: loop body
LE: loop exit
PB: predicated region body
PF: predicated region fallthrough
CT: control target
= control target key end

     0   :  { %9 = vsyncpa [#allocation3], 0  ;;  %s1062_s0 = inlined_call_operand.hbm [shape: bf16[128,128], index: 0, kind: input, shape index: {}]   ;;  %s1063_s1 = inlined_call_operand.hbm [shape: bf16[128,128], index: 1, kind: input, shape index: {}]   ;;  %s1064_s2 = inlined_call_operand.hbm [shape: bf16[128,128], index: 2, kind: input, shape index: {}]   ;;  %s1065_s3 = inlined_call_operand.hbm [shape: bf16[128,128], index: 3, kind: input, shape index: {}]   ;;  %s1066_s4 = inlined_call_operand.hbm [shape: bf16[128,128], index: 4, kind: output, shape index: {}]  }
   0x1   :  { %10 = vsyncpa [#allocation6], 0 }
   0x2   :  { %11 = vsyncpa [#allocation9], 0 }
   0x3   :  { %12 = vsyncpa [#allocation4], 0  ;;  %s30_s17 = sshll.u32 %s1063_s1, 4  ;;  %s968_s18 = smov [#allocation5]   ;;  %s31_s17 = int_to_ptr.hbm [resolvable:$true] %s30_s17 }
   0x4   :  { %s32_s19 = sshll.u32 %s968_s18, 4  ;;  %s17_s22 = sshll.u32 %s1062_s0, 4  ;;  %s33_s19 = int_to_ptr.vmem [resolvable:$true] %s32_s19  ;;  %s18_s22 = int_to_ptr.hbm [resolvable:$true] %s17_s22 }
   0x5   :  { %s969_s23 = smov 64   ;;  %s970_s24 = smov 4  }
   0x6   :  { %38 = dma.hbm_to_vmem [thread:$0]  %s31_s17, 1024, %s33_s19, [#allocation6], %s969_s23, %s969_s23, %s970_s24  }
   0x7   :  { %s971_s25 = smov [#allocation2]   ;;  %s43_s1 = sshll.u32 %s1064_s2, 4  ;;  %s44_s1 = int_to_ptr.hbm [resolvable:$true] %s43_s1 }
   0x8   :  { %s19_s26 = sshll.u32 %s971_s25, 4  ;;  %s56_s30 = sshll.u32 %s1065_s3, 4  ;;  %s20_s26 = int_to_ptr.vmem [resolvable:$true] %s19_s26  ;;  %s57_s30 = int_to_ptr.hbm [resolvable:$true] %s56_s30 }
   0x9   :  { %25 = dma.hbm_to_vmem [thread:$0]  %s18_s22, 1024, %s20_s26, [#allocation3], %s969_s23, %s969_s23, %s970_s24  }
   0xa   :  { %s972_s5 = smov [#allocation7]   ;;  %s973_s7 = smov [#allocation8]  }
   0xb   :  { %s45_s6 = sshll.u32 %s972_s5, 4  ;;  %s58_s2 = sshll.u32 %s973_s7, 4  ;;  %s46_s6 = int_to_ptr.vmem [resolvable:$true] %s45_s6  ;;  %s59_s2 = int_to_ptr.vmem [resolvable:$true] %s58_s2 }
   0xc   :  { %51 = dma.hbm_to_vmem [thread:$0]  %s44_s1, 1024, %s46_s6, [#allocation6], %s969_s23, %s969_s23, %s970_s24  }
   0xd   :  { %64 = dma.hbm_to_vmem [thread:$0]  %s57_s30, 1024, %s59_s2, [#allocation9], %s969_s23, %s969_s23, %s970_s24  }
   0xe   :  { %960 = dma.done.wait [#allocation3], 1024  }
   0xf   :  { %961 = vsyncadd [#allocation3], 4294966272 }
  0x10   :  { %962 = dma.done.wait [#allocation6], 2048  }
  0x11   :  { %963 = vsyncadd [#allocation6], 4294965248 }
  0x12   :  { %964 = dma.done.wait [#allocation9], 1024  }
  0x13   :  { %965 = vsyncadd [#allocation9], 4294966272  ;;  %v777_v0 = vld [vmem:[#allocation7 + $0x38] sm:$0xff]  ;;  %v776_v1 = vld [vmem:[#allocation7 + $0x30] sm:$0xff]  ;;  %s974_s3 = smov [#allocation10]   ;;  %s611_s11 = sshll.u32 %s1066_s4, 4  ;;  %s612_s11 = int_to_ptr.hbm [resolvable:$true] %s611_s11 }
  0x14   :  { %225 = vmatpush.bf16.msra.mxu0 %v777_v0  ;;  %v775_v2 = vld [vmem:[#allocation7 + $0x28] sm:$0xff]  ;;  %v774_v3 = vld [vmem:[#allocation7 + $0x20] sm:$0xff]  ;;  %v773_v4 = vld [vmem:[#allocation7 + $0x18] sm:$0xff]  ;;  %s609_s8 = sshll.u32 %s974_s3, 4  ;;  %s610_s8 = int_to_ptr.vmem [resolvable:$true] %s609_s8 }
  0x15   :  { %v772_v5 = vld [vmem:[#allocation7 + $0x10] sm:$0xff]  ;;  %v771_v6 = vld [vmem:[#allocation7 + $0x8] sm:$0xff]  ;;  %v770_v7 = vld [vmem:[#allocation7] sm:$0xff] }
  0x16   :  { %v762_v8 = vld [vmem:[#allocation5] sm:$0xff]  ;;  %v763_v9 = vld [vmem:[#allocation5 + $0x8] sm:$0xff]  ;;  %v764_v10 = vld [vmem:[#allocation5 + $0x10] sm:$0xff] }
  0x17   :  { %v765_v11 = vld [vmem:[#allocation5 + $0x18] sm:$0xff]  ;;  %v766_v12 = vld [vmem:[#allocation5 + $0x20] sm:$0xff]  ;;  %v767_v13 = vld [vmem:[#allocation5 + $0x28] sm:$0xff] }
  0x18   :  { %226 = vmatpush.bf16.msra.mxu0 %v776_v1  ;;  %v768_v14 = vld [vmem:[#allocation5 + $0x30] sm:$0xff]  ;;  %v769_v15 = vld [vmem:[#allocation5 + $0x38] sm:$0xff]  ;;  %v1024_v40 = vld [vmem:[#allocation2] sm:$0xff] }
  0x19   :  { %v1027_v41 = vld [vmem:[#allocation2 + $0x8] sm:$0xff]  ;;  %v1030_v42 = vld [vmem:[#allocation2 + $0x10] sm:$0xff]  ;;  %v1033_v43 = vld [vmem:[#allocation2 + $0x18] sm:$0xff] }
  0x1a   :  { %v1036_v44 = vld [vmem:[#allocation2 + $0x20] sm:$0xff]  ;;  %v785_v45 = vld [vmem:[#allocation8 + $0x38] sm:$0xff]  ;;  %v784_v46 = vld [vmem:[#allocation8 + $0x30] sm:$0xff] }
  0x1b   :  { %467 = vmatpush.bf16.msra.mxu2 %v785_v45  ;;  %v1039_v47 = vld [vmem:[#allocation2 + $0x28] sm:$0xff]  ;;  %v782_v49 = vld [vmem:[#allocation8 + $0x20] sm:$0xff]  ;;  %v781_v50 = vld [vmem:[#allocation8 + $0x18] sm:$0xff] }
  0x1c   :  { %227 = vmatpush.bf16.msra.mxu0 %v775_v2  ;;  %v783_v48 = vld [vmem:[#allocation8 + $0x28] sm:$0xff]  ;;  %v1042_v51 = vld [vmem:[#allocation2 + $0x30] sm:$0xff]  ;;  %v778_v54 = vld [vmem:[#allocation8] sm:$0xff] }
  0x1d   :  { %v780_v52 = vld [vmem:[#allocation8 + $0x10] sm:$0xff]  ;;  %v779_v53 = vld [vmem:[#allocation8 + $0x8] sm:$0xff]  ;;  %v1045_v55 = vld [vmem:[#allocation2 + $0x38] sm:$0xff] }
  0x1f   :  { %468 = vmatpush.bf16.msra.mxu2 %v784_v46 }
  0x20   :  { %228 = vmatpush.bf16.msra.mxu0 %v774_v3 }
  0x23   :  { %469 = vmatpush.bf16.msra.mxu2 %v783_v48 }
  0x24   :  { %229 = vmatpush.bf16.msra.mxu0 %v773_v4 }
  0x27   :  { %470 = vmatpush.bf16.msra.mxu2 %v782_v49 }
  0x28   :  { %230 = vmatpush.bf16.msra.mxu0 %v772_v5 }
  0x2b   :  { %471 = vmatpush.bf16.msra.mxu2 %v781_v50 }
  0x2c   :  { %231 = vmatpush.bf16.msra.mxu0 %v771_v6 }
  0x2f   :  { %472 = vmatpush.bf16.msra.mxu2 %v780_v52 }
  0x30   :  { %232 = vmatpush.bf16.msra.mxu0 %v770_v7 }
  0x33   :  { %233 = vmatmul.bf16.vlgmr.msra.gmra.mxu0 %v762_v8  ;;  %473 = vmatpush.bf16.msra.mxu2 %v779_v53 }
  0x37   :  { %474 = vmatpush.bf16.msra.mxu2 %v778_v54 }
  0x43   :  { %238 = vmatmul.bf16.gmra.mxu0 %v763_v9 }
  0x53   :  { %243 = vmatmul.bf16.gmra.mxu0 %v764_v10 }
  0x63   :  { %248 = vmatmul.bf16.gmra.mxu0 %v765_v11 }
  0x73   :  { %253 = vmatmul.bf16.gmra.mxu0 %v766_v12 }
  0x83   :  { %258 = vmatmul.bf16.gmra.mxu0 %v767_v13 }
  0x93   :  { %263 = vmatmul.bf16.gmra.mxu0 %v768_v14 }
  0xa3   :  { %268 = vmatmul.bf16.gmra.mxu0 %v769_v15 }
  0xb0   :  { %v234_v16 = vpop.f32.mrf.mxu0 }
  0xb8   :  { %v236_v17 = vpop.f32.mrf.mxu0 }
  0xb9   :  { %v274_v18 = vpack.c.bf16 %v236_v17, %v234_v16 }
  0xc0   :  { %v239_v19 = vpop.f32.mrf.mxu0 }
  0xc8   :  { %v241_v20 = vpop.f32.mrf.mxu0 }
  0xc9   :  { %v275_v21 = vpack.c.bf16 %v241_v20, %v239_v19 }
  0xd0   :  { %v244_v22 = vpop.f32.mrf.mxu0 }
  0xd8   :  { %v246_v23 = vpop.f32.mrf.mxu0 }
  0xd9   :  { %v276_v24 = vpack.c.bf16 %v246_v23, %v244_v22 }
  0xe0   :  { %v249_v25 = vpop.f32.mrf.mxu0 }
  0xe8   :  { %v251_v26 = vpop.f32.mrf.mxu0 }
  0xe9   :  { %v277_v27 = vpack.c.bf16 %v251_v26, %v249_v25 }
  0xf0   :  { %v254_v28 = vpop.f32.mrf.mxu0 }
  0xf8   :  { %v256_v29 = vpop.f32.mrf.mxu0 }
  0xf9   :  { %v278_v39 = vpack.c.bf16 %v256_v29, %v254_v28 }
 0x100   :  { %v259_v30 = vpop.f32.mrf.mxu0 }
 0x108   :  { %v261_v31 = vpop.f32.mrf.mxu0 }
 0x109   :  { %v279_v38 = vpack.c.bf16 %v261_v31, %v259_v30 }
 0x110   :  { %v264_v32 = vpop.f32.mrf.mxu0 }
 0x118   :  { %v266_v33 = vpop.f32.mrf.mxu0 }
 0x119   :  { %v280_v37 = vpack.c.bf16 %v266_v33, %v264_v32 }
 0x120   :  { %v269_v34 = vpop.f32.mrf.mxu0 }
 0x128   :  { %v271_v35 = vpop.f32.mrf.mxu0 }
 0x129   :  { %v281_v36 = vpack.c.bf16 %v271_v35, %v269_v34 }
 0x12b   :  { %330 = vmatpush.bf16.msra.mxu1 %v281_v36 }
 0x12f   :  { %331 = vmatpush.bf16.msra.mxu1 %v280_v37 }
 0x133   :  { %332 = vmatpush.bf16.msra.mxu1 %v279_v38 }
 0x137   :  { %333 = vmatpush.bf16.msra.mxu1 %v278_v39 }
 0x13b   :  { %334 = vmatpush.bf16.msra.mxu1 %v277_v27 }
 0x13f   :  { %335 = vmatpush.bf16.msra.mxu1 %v276_v24 }
 0x143   :  { %336 = vmatpush.bf16.msra.mxu1 %v275_v21 }
 0x147   :  { %337 = vmatpush.bf16.msra.mxu1 %v274_v18 }
 0x14a   :  { %338 = vmatmul.bf16.vlgmr.msra.gmra.mxu1 %v1024_v40 }
 0x15a   :  { %343 = vmatmul.bf16.gmra.mxu1 %v1027_v41 }
 0x16a   :  { %348 = vmatmul.bf16.gmra.mxu1 %v1030_v42 }
 0x17a   :  { %353 = vmatmul.bf16.gmra.mxu1 %v1033_v43 }
 0x18a   :  { %358 = vmatmul.bf16.gmra.mxu1 %v1036_v44 }
 0x19a   :  { %363 = vmatmul.bf16.gmra.mxu1 %v1039_v47 }
 0x1aa   :  { %368 = vmatmul.bf16.gmra.mxu1 %v1042_v51 }
 0x1ba   :  { %373 = vmatmul.bf16.gmra.mxu1 %v1045_v55 }
 0x1c7   :  { %v339_v56 = vpop.f32.mrf.mxu1 }
 0x1c8   :  { %v379_v58 = vmax.f32 %v339_v56, 0.0 }
 0x1cf   :  { %v341_v57 = vpop.f32.mrf.mxu1 }
 0x1d0   :  { %v380_v59 = vmax.f32 %v341_v57, 0.0 }
 0x1d2   :  { %v395_v60 = vpack.c.bf16 %v380_v59, %v379_v58 }
 0x1d4   :  { %475 = vmatmul.bf16.vlgmr.msra.gmra.mxu2 %v395_v60 }
 0x1d7   :  { %v344_v61 = vpop.f32.mrf.mxu1 }
 0x1d8   :  { %v381_v63 = vmax.f32 %v344_v61, 0.0 }
 0x1df   :  { %v346_v62 = vpop.f32.mrf.mxu1 }
 0x1e0   :  { %v382_v0 = vmax.f32 %v346_v62, 0.0 }
 0x1e2   :  { %v396_v1 = vpack.c.bf16 %v382_v0, %v381_v63 }
 0x1e4   :  { %480 = vmatmul.bf16.gmra.mxu2 %v396_v1 }
 0x1e7   :  { %v349_v2 = vpop.f32.mrf.mxu1 }
 0x1e8   :  { %v383_v4 = vmax.f32 %v349_v2, 0.0 }
 0x1ef   :  { %v351_v3 = vpop.f32.mrf.mxu1 }
 0x1f0   :  { %v384_v5 = vmax.f32 %v351_v3, 0.0 }
 0x1f2   :  { %v397_v6 = vpack.c.bf16 %v384_v5, %v383_v4 }
 0x1f4   :  { %485 = vmatmul.bf16.gmra.mxu2 %v397_v6 }
 0x1f7   :  { %v354_v7 = vpop.f32.mrf.mxu1 }
 0x1f8   :  { %v385_v9 = vmax.f32 %v354_v7, 0.0 }
 0x1ff   :  { %v356_v8 = vpop.f32.mrf.mxu1 }
 0x200   :  { %v386_v10 = vmax.f32 %v356_v8, 0.0 }
 0x202   :  { %v398_v11 = vpack.c.bf16 %v386_v10, %v385_v9 }
 0x204   :  { %490 = vmatmul.bf16.gmra.mxu2 %v398_v11 }
 0x207   :  { %v359_v12 = vpop.f32.mrf.mxu1 }
 0x208   :  { %v387_v14 = vmax.f32 %v359_v12, 0.0 }
 0x20f   :  { %v361_v13 = vpop.f32.mrf.mxu1 }
 0x210   :  { %v388_v15 = vmax.f32 %v361_v13, 0.0 }
 0x212   :  { %v399_v16 = vpack.c.bf16 %v388_v15, %v387_v14 }
 0x214   :  { %495 = vmatmul.bf16.gmra.mxu2 %v399_v16 }
 0x217   :  { %v364_v17 = vpop.f32.mrf.mxu1 }
 0x218   :  { %v389_v19 = vmax.f32 %v364_v17, 0.0 }
 0x21f   :  { %v366_v18 = vpop.f32.mrf.mxu1 }
 0x220   :  { %v390_v20 = vmax.f32 %v366_v18, 0.0 }
 0x222   :  { %v400_v21 = vpack.c.bf16 %v390_v20, %v389_v19 }
 0x224   :  { %500 = vmatmul.bf16.gmra.mxu2 %v400_v21 }
 0x227   :  { %v369_v22 = vpop.f32.mrf.mxu1 }
 0x228   :  { %v391_v24 = vmax.f32 %v369_v22, 0.0 }
 0x22f   :  { %v371_v23 = vpop.f32.mrf.mxu1 }
 0x230   :  { %v392_v25 = vmax.f32 %v371_v23, 0.0 }
 0x232   :  { %v401_v26 = vpack.c.bf16 %v392_v25, %v391_v24 }
 0x234   :  { %505 = vmatmul.bf16.gmra.mxu2 %v401_v26 }
 0x237   :  { %v374_v27 = vpop.f32.mrf.mxu1 }
 0x238   :  { %v393_v29 = vmax.f32 %v374_v27, 0.0 }
 0x23f   :  { %v376_v28 = vpop.f32.mrf.mxu1 }
 0x240   :  { %v394_v30 = vmax.f32 %v376_v28, 0.0 }
 0x242   :  { %v402_v31 = vpack.c.bf16 %v394_v30, %v393_v29 }
 0x244   :  { %510 = vmatmul.bf16.gmra.mxu2 %v402_v31 }
 0x257   :  { %v476_v32 = vpop.f32.mrf.mxu2 }
 0x25f   :  { %v478_v33 = vpop.f32.mrf.mxu2 }
 0x260   :  { %v516_v34 = vpack.c.bf16 %v478_v33, %v476_v32 }
 0x267   :  { %v481_v35 = vpop.f32.mrf.mxu2 }
 0x26f   :  { %v483_v36 = vpop.f32.mrf.mxu2 }
 0x270   :  { %v517_v37 = vpack.c.bf16 %v483_v36, %v481_v35 }
 0x277   :  { %v486_v38 = vpop.f32.mrf.mxu2 }
 0x27f   :  { %v488_v39 = vpop.f32.mrf.mxu2 }
 0x280   :  { %v518_v45 = vpack.c.bf16 %v488_v39, %v486_v38 }
 0x287   :  { %v491_v46 = vpop.f32.mrf.mxu2 }
 0x28f   :  { %v493_v48 = vpop.f32.mrf.mxu2 }
 0x290   :  { %v519_v49 = vpack.c.bf16 %v493_v48, %v491_v46 }
 0x297   :  { %v496_v50 = vpop.f32.mrf.mxu2 }
 0x29f   :  { %v498_v52 = vpop.f32.mrf.mxu2 }
 0x2a0   :  { %v520_v63 = vpack.c.bf16 %v498_v52, %v496_v50 }
 0x2a7   :  { %v501_v53 = vpop.f32.mrf.mxu2 }
 0x2af   :  { %v503_v54 = vpop.f32.mrf.mxu2 }
 0x2b0   :  { %v521_v62 = vpack.c.bf16 %v503_v54, %v501_v53 }
 0x2b7   :  { %v506_v56 = vpop.f32.mrf.mxu2 }
 0x2bf   :  { %v508_v57 = vpop.f32.mrf.mxu2 }
 0x2c0   :  { %v522_v61 = vpack.c.bf16 %v508_v57, %v506_v56 }
 0x2c7   :  { %v511_v58 = vpop.f32.mrf.mxu2 }
 0x2cf   :  { %v513_v59 = vpop.f32.mrf.mxu2 }
 0x2d0   :  { %v523_v60 = vpack.c.bf16 %v513_v59, %v511_v58 }
 0x2d2   :  { %524 = vmatpush.bf16.msra.mxu3 %v523_v60 }
 0x2d6   :  { %525 = vmatpush.bf16.msra.mxu3 %v522_v61 }
 0x2da   :  { %526 = vmatpush.bf16.msra.mxu3 %v521_v62 }
 0x2de   :  { %527 = vmatpush.bf16.msra.mxu3 %v520_v63 }
 0x2e2   :  { %528 = vmatpush.bf16.msra.mxu3 %v519_v49 }
 0x2e6   :  { %529 = vmatpush.bf16.msra.mxu3 %v518_v45 }
 0x2ea   :  { %530 = vmatpush.bf16.msra.mxu3 %v517_v37 }
 0x2ee   :  { %531 = vmatpush.bf16.msra.mxu3 %v516_v34 }
 0x2f1   :  { %532 = vmatmul.bf16.vlgmr.msra.gmra.mxu3 %v1024_v40 }
 0x301   :  { %537 = vmatmul.bf16.gmra.mxu3 %v1027_v41 }
 0x311   :  { %542 = vmatmul.bf16.gmra.mxu3 %v1030_v42 }
 0x321   :  { %547 = vmatmul.bf16.gmra.mxu3 %v1033_v43 }
 0x331   :  { %552 = vmatmul.bf16.gmra.mxu3 %v1036_v44 }
 0x341   :  { %557 = vmatmul.bf16.gmra.mxu3 %v1039_v47 }
 0x351   :  { %562 = vmatmul.bf16.gmra.mxu3 %v1042_v51 }
 0x361   :  { %567 = vmatmul.bf16.gmra.mxu3 %v1045_v55 }
 0x374   :  { %v533_v0 = vpop.f32.mrf.mxu3 }
 0x37c   :  { %v535_v1 = vpop.f32.mrf.mxu3 }
 0x37d   :  { %v789_v2 = vpack.c.bf16 %v535_v1, %v533_v0 }
 0x37f   :  { %790 = vst [vmem:[#allocation10] sm:$0xff] %v789_v2  }
 0x384   :  { %v538_v3 = vpop.f32.mrf.mxu3 }
 0x38c   :  { %v540_v40 = vpop.f32.mrf.mxu3 }
 0x38d   :  { %v794_v4 = vpack.c.bf16 %v540_v40, %v538_v3 }
 0x38f   :  { %826 = vst [vmem:[#allocation10 + $0x8] sm:$0xff] %v794_v4  }
 0x394   :  { %v543_v41 = vpop.f32.mrf.mxu3 }
 0x39c   :  { %v545_v42 = vpop.f32.mrf.mxu3 }
 0x39d   :  { %v799_v5 = vpack.c.bf16 %v545_v42, %v543_v41 }
 0x39f   :  { %827 = vst [vmem:[#allocation10 + $0x10] sm:$0xff] %v799_v5  }
 0x3a4   :  { %v548_v43 = vpop.f32.mrf.mxu3 }
 0x3ac   :  { %v550_v44 = vpop.f32.mrf.mxu3 }
 0x3ad   :  { %v804_v6 = vpack.c.bf16 %v550_v44, %v548_v43 }
 0x3af   :  { %828 = vst [vmem:[#allocation10 + $0x18] sm:$0xff] %v804_v6  }
 0x3b4   :  { %v553_v47 = vpop.f32.mrf.mxu3 }
 0x3bc   :  { %v555_v51 = vpop.f32.mrf.mxu3 }
 0x3bd   :  { %v809_v7 = vpack.c.bf16 %v555_v51, %v553_v47 }
 0x3bf   :  { %829 = vst [vmem:[#allocation10 + $0x20] sm:$0xff] %v809_v7  }
 0x3c4   :  { %v558_v55 = vpop.f32.mrf.mxu3 }
 0x3cc   :  { %v560_v8 = vpop.f32.mrf.mxu3 }
 0x3cd   :  { %v814_v9 = vpack.c.bf16 %v560_v8, %v558_v55 }
 0x3cf   :  { %830 = vst [vmem:[#allocation10 + $0x28] sm:$0xff] %v814_v9  }
 0x3d4   :  { %v563_v10 = vpop.f32.mrf.mxu3 }
 0x3dc   :  { %v565_v11 = vpop.f32.mrf.mxu3 }
 0x3dd   :  { %v819_v12 = vpack.c.bf16 %v565_v11, %v563_v10 }
 0x3df   :  { %831 = vst [vmem:[#allocation10 + $0x30] sm:$0xff] %v819_v12  }
 0x3e4   :  { %v568_v13 = vpop.f32.mrf.mxu3 }
 0x3ec   :  { %v570_v14 = vpop.f32.mrf.mxu3 }
 0x3ed   :  { %v824_v15 = vpack.c.bf16 %v570_v14, %v568_v13 }
 0x3ef   :  { %832 = vst [vmem:[#allocation10 + $0x38] sm:$0xff] %v824_v15  }
 0x3f0   :  { %617 = dma.vmem_to_hbm [thread:$0]  %s610_s8, 1024, %s612_s11, [#allocation4], %s969_s23, %s969_s23, %s970_s24  }
 0x3f1   :  { %966 = dma.done.wait [#allocation4], 1024  }
 0x3f2   :  { %967 = vsyncadd [#allocation4], 4294966272 }
 0x3f3   :  { %622 = vsyncpa [#allocation3], 1 }
 0x3f4   :  { %623 = vsyncpa [#allocation6], 1 }
 0x3f5   :  { %624 = vsyncpa [#allocation9], 1 }
 0x3f6   :  { %625 = vsyncpa [#allocation4], 1 }

</bundles_post_ra>
